<compile_context>
chip_gen: v6e
topology: v6e:2x2x1
jax: 0.10.0
libtpu: 0.0.40
codegen_flags: <defaults>
</compile_context>

<pallas_src>
import functools

import jax
import jax.numpy as jnp
from jax.experimental import pallas as pl
from jax.experimental.pallas import tpu as pltpu


def _round_up(a: int, b: int) -> int:
    return (a + b - 1) // b * b


def _cdiv(a: int, b: int) -> int:
    return (a + b - 1) // b


@functools.lru_cache(maxsize=None)
def _chip_config():
    """Returns (vmem_capacity_bytes, tensorcores_per_chip, mxu_width)."""
    kind = ""
    try:
        kind = jax.devices()[0].device_kind.lower()
    except Exception:  # pragma: no cover - defensive
        pass
    vmem = None
    get_info = getattr(pltpu, "get_tpu_info", None)
    if get_info is not None:
        try:
            vmem = int(getattr(get_info(), "vmem_capacity_bytes", 0)) or None
        except Exception:
            vmem = None
    if vmem is None:
        vmem = (64 if "v7" in kind else 128) * 2**20
    num_tc = 2 if ("v7" in kind or vmem <= 64 * 2**20) else 1
    mxu = 256 if ("v6" in kind or "v7" in kind) else 128
    return vmem, num_tc, mxu


def _auto_lane_align(d: int) -> int:
    """128-lane alignment; 256 on 256-wide-MXU chips once d is large enough."""
    _, _, mxu = _chip_config()
    return 256 if (mxu >= 256 and d >= 256) else 128


def _const_spec(shape):
    """BlockSpec for a grid-invariant operand: single-buffered if supported."""
    idx = lambda i: (0,) * len(shape)
    if hasattr(pl, "Buffered"):
        try:
            return pl.BlockSpec(shape, idx, pipeline_mode=pl.Buffered(1))
        except TypeError:  # older jax without pipeline_mode kwarg
            pass
    return pl.BlockSpec(shape, idx)


def _residual_kernel(x_ref, w1_ref, b1_ref, w2_ref, b2_ref, o_ref):
    # x_ref:  (tm, d_pad)  input rows (also the residual source)
    # w1/w2:  (d_pad, d_pad) compute dtype (bf16 default), b1/b2: (1, d_pad) f32
    x = x_ref[...]

    # lin1 + relu (dropout is identity at p == 0.0); MXU in compute dtype,
    # f32 accumulation, bias/relu in f32.
    h = jnp.dot(x.astype(w1_ref.dtype), w1_ref[...],
                preferred_element_type=jnp.float32)
    h = jnp.maximum(h + b1_ref[...], 0.0)
    # Re-quantize the spilled intermediate to the compute dtype (2 B/elem on
    # bf16) before it round-trips VMEM on its way back into the MXU.
    h = h.astype(w2_ref.dtype)

    # lin2 + relu, residual add against the (f32) input rows, single downcast.
    y = jnp.dot(h, w2_ref[...], preferred_element_type=jnp.float32)
    y = jnp.maximum(y + b2_ref[...], 0.0)
    o_ref[...] = (y + x.astype(jnp.float32)).astype(o_ref.dtype)


def pack_params(w1, b1, w2, b2, *, compute_dtype=jnp.bfloat16, lane_align=None):
    """One-time pad (lane-dense) + cast of the weights.  Do this at load time and
    reuse the packed params across calls; it is a full HBM pass over the weights."""
    d_in, d_out = w1.shape
    assert d_in == d_out, "residual (y + x) requires in_dim == out_dim"
    assert w2.shape == (d_out, d_out) and b1.shape == (d_out,) and b2.shape == (d_out,)
    d = d_in
    align = lane_align if lane_align is not None else _auto_lane_align(d)
    d_pad = _round_up(d, align)
    pad = d_pad - d
    w1_p = jnp.pad(w1, ((0, pad), (0, pad))).astype(compute_dtype)
    w2_p = jnp.pad(w2, ((0, pad), (0, pad))).astype(compute_dtype)
    b1_p = jnp.pad(b1.astype(jnp.float32), (0, pad)).reshape(1, d_pad)
    b2_p = jnp.pad(b2.astype(jnp.float32), (0, pad)).reshape(1, d_pad)
    return w1_p, b1_p, w2_p, b2_p


@functools.partial(jax.jit,
                   static_argnames=("d", "tm", "out_dtype", "x_stream_dtype"))
def residual_layer_packed(x, w1_p, b1_p, w2_p, b2_p, *, d, tm=512,
                          out_dtype=None, x_stream_dtype=None):
    """out = relu(relu(x@W1 + b1) @ W2 + b2) + x using pre-packed weights.

    x: (..., d); packed weights from `pack_params` (shape (d_pad, d_pad))."""
    orig_shape = x.shape
    assert orig_shape[-1] == d
    d_pad = w1_p.shape[0]
    assert w1_p.shape == (d_pad, d_pad) and w2_p.shape == (d_pad, d_pad)
    assert b1_p.shape == (1, d_pad) and b2_p.shape == (1, d_pad)

    compute_dtype = w1_p.dtype
    out_dtype = x.dtype if out_dtype is None else out_dtype
    stream_dtype = jnp.float32 if x_stream_dtype is None else x_stream_dtype

    x2d = x.reshape(-1, d).astype(stream_dtype)
    m = x2d.shape[0]

    # ---- chip-aware VMEM budget ---------------------------------------------
    vmem_cap, num_tc, _ = _chip_config()
    usable = int(vmem_cap * 0.85)                      # ~15% headroom
    w_itemsize = jnp.dtype(compute_dtype).itemsize
    x_itemsize = jnp.dtype(stream_dtype).itemsize
    out_itemsize = jnp.dtype(out_dtype).itemsize
    wbytes = 2 * d_pad * d_pad * w_itemsize + 2 * d_pad * 4  # W1+W2 (x1 buf) + biases
    if wbytes > usable // 2:
        # TODO(synk): K/N-tiled grid axes ("arbitrary") with an f32 accumulator
        # scratch (pl.when init/finalize) for feature dims whose resident
        # weights do not fit this chip's VMEM.
        raise NotImplementedError(
            f"feature dim {d} (padded {d_pad}) needs {wbytes>>20} MiB of resident "
            f"weights; exceeds the {usable>>20} MiB VMEM budget of this chip")

    def _tile_bytes(t):
        return (2 * t * d_pad * x_itemsize          # double-buffered x tiles
                + 2 * t * d_pad * out_itemsize      # double-buffered out tiles
                + t * d_pad * w_itemsize            # intermediate h (compute dtype)
                + t * d_pad * (w_itemsize + 4))     # MXU staging copy of x + f32 y

    # ---- row tiling: big tiles, >= 2 steps per TensorCore, fit VMEM ----------
    m_ceil8 = _round_up(max(m, 1), 8)
    tm_eff = _round_up(min(tm, m_ceil8), 8)
    min_steps = 2 * num_tc                              # 2 on v5e/v6e, 4 on v7x
    if m_ceil8 >= 8 * min_steps and _cdiv(m_ceil8, tm_eff) < min_steps:
        tm_eff = max(8, _round_up(_cdiv(m_ceil8, min_steps), 8))
    while tm_eff > 8 and wbytes + _tile_bytes(tm_eff) > usable:
        tm_eff = max(8, _round_up(tm_eff // 2, 8))
    grid = _cdiv(m, tm_eff)                             # ragged tail = boundary block

    # Only pad columns (and only when d is not already lane aligned); rows are
    # handled by Pallas boundary blocks, so no wrapper-side copy of x.
    pad_cols = d_pad - d
    x_p = jnp.pad(x2d, ((0, 0), (0, pad_cols))) if pad_cols else x2d

    vmem_need = wbytes + _tile_bytes(tm_eff)
    vmem_limit = int(min(usable, max(int(1.25 * vmem_need), 32 * 2**20)))

    cost = pl.CostEstimate(
        flops=2 * 2 * m * d_pad * d_pad,
        transcendentals=0,
        bytes_accessed=(m * d_pad * x_itemsize
                        + 2 * d_pad * d_pad * w_itemsize + 2 * d_pad * 4
                        + m * d_pad * out_itemsize),
    )

    out = pl.pallas_call(
        _residual_kernel,
        out_shape=jax.ShapeDtypeStruct((m, d_pad), out_dtype),
        grid_spec=pltpu.PrefetchScalarGridSpec(
            num_scalar_prefetch=0,
            grid=(grid,),
            in_specs=[
                pl.BlockSpec((tm_eff, d_pad), lambda i: (i, 0)),   # x rows
                _const_spec((d_pad, d_pad)),                       # W1 (resident)
                _const_spec((1, d_pad)),                           # b1
                _const_spec((d_pad, d_pad)),                       # W2 (resident)
                _const_spec((1, d_pad)),                           # b2
            ],
            out_specs=pl.BlockSpec((tm_eff, d_pad), lambda i: (i, 0)),
        ),
        compiler_params=pltpu.CompilerParams(
            dimension_semantics=("parallel",),
            vmem_limit_bytes=vmem_limit,
        ),
        cost_estimate=cost,
    )(x_p, w1_p, b1_p, w2_p, b2_p)

    if pad_cols:
        out = out[:, :d]
    return out.reshape(*orig_shape[:-1], d)


@functools.partial(jax.jit, static_argnames=("out_dtype",))
def _xla_fallback(x, w1, b1, w2, b2, out_dtype=None):
    out_dtype = x.dtype if out_dtype is None else out_dtype
    h = jnp.maximum(x @ w1 + b1, 0.0)
    y = jnp.maximum(h @ w2 + b2, 0.0)
    return (y + x).astype(out_dtype)


def residual_layer(x, w1, b1, w2, b2, *, compute_dtype=jnp.bfloat16, tm=512,
                   out_dtype=None, x_stream_dtype=None, min_pallas_dim=128):
    """Convenience wrapper: packs the weights per call.  For repeated calls, use
    pack_params() once + residual_layer_packed()."""
    d = x.shape[-1]
    if d < min_pallas_dim:
        # Tiny feature dims: padding to 128 lanes inflates HBM traffic / MXU work
        # for a trivially memory-bound op; plain XLA wins.
        return _xla_fallback(x, w1, b1, w2, b2, out_dtype=out_dtype)
    packed = pack_params(w1, b1, w2, b2, compute_dtype=compute_dtype)
    return residual_layer_packed(x, *packed, d=d, tm=tm, out_dtype=out_dtype,
                                 x_stream_dtype=x_stream_dtype)


def _ref_forward(x, w1, b1, w2, b2):
    hp = jax.lax.Precision.HIGHEST
    h = jnp.maximum(jnp.dot(x, w1, precision=hp) + b1, 0.0)
    y = jnp.maximum(jnp.dot(h, w2, precision=hp) + b2, 0.0)
    return y + x


def _make_params(key, d):
    kw1, kb1, kw2, kb2 = jax.random.split(key, 4)
    bound = 1.0 / (d ** 0.5)
    # PyTorch-style uniform init; weights stored as (in, out), i.e. transposed
    # relative to nn.Linear's (out, in).
    w1 = jax.random.uniform(kw1, (d, d), jnp.float32, -bound, bound)
    b1 = jax.random.uniform(kb1, (d,), jnp.float32, -bound, bound)
    w2 = jax.random.uniform(kw2, (d, d), jnp.float32, -bound, bound)
    b2 = jax.random.uniform(kb2, (d,), jnp.float32, -bound, bound)
    return w1, b1, w2, b2


if __name__ == "__main__":
    # Small shapes consistent with the module: batch=2, seq=8, in_dim=out_dim=128
    # (128 keeps the Pallas path lane-dense with zero wrapper-side padding).
    batch, seq, d = 2, 8, 128
    key = jax.random.PRNGKey(0)
    kx, kp = jax.random.split(key, 2)

    x = jax.random.normal(kx, (batch, seq, d), dtype=jnp.float32)
    w1, b1, w2, b2 = _make_params(kp, d)
    ref = _ref_forward(x, w1, b1, w2, b2)

    # Hot path: pack (pad + bf16 cast) the weights ONCE, reuse across calls.
    packed_bf16 = pack_params(w1, b1, w2, b2)                    # bf16 MXU feed
    out_bf16 = jax.block_until_ready(residual_layer_packed(x, *packed_bf16, d=d))
    assert out_bf16.shape == (batch, seq, d)
    assert jnp.allclose(out_bf16, ref, atol=5e-2, rtol=5e-2), "bf16 path mismatch"

    # Full-precision compute path for a tighter correctness check.
    packed_f32 = pack_params(w1, b1, w2, b2, compute_dtype=jnp.float32)
    out_f32 = jax.block_until_ready(residual_layer_packed(x, *packed_f32, d=d))
    assert out_f32.shape == (batch, seq, d)
    assert jnp.allclose(out_f32, ref, atol=1e-2, rtol=1e-2), "f32 path mismatch"

    # Convenience wrapper + tiny-feature-dim short circuit (d=32 -> XLA path).
    d_small = 32
    xs = jax.random.normal(kx, (batch, seq, d_small), dtype=jnp.float32)
    ws1, bs1, ws2, bs2 = _make_params(kp, d_small)
    out_small = jax.block_until_ready(residual_layer(xs, ws1, bs1, ws2, bs2))
    ref_small = _ref_forward(xs, ws1, bs1, ws2, bs2)
    assert out_small.shape == (batch, seq, d_small)
    assert jnp.allclose(out_small, ref_small, atol=3e-2, rtol=3e-2), "fallback mismatch"

    print("KERNEL_OK")
</pallas_src>

<mosaic_0001>
module attributes {stable_mosaic.version = 11 : i64} {
  func.func @_residual_kernel(%arg0: i32, %arg1: memref<8x128xf32, #tpu.memory_space<vmem>>, %arg2: memref<128x128xbf16, #tpu.memory_space<vmem>>, %arg3: memref<1x128xf32, #tpu.memory_space<vmem>>, %arg4: memref<128x128xbf16, #tpu.memory_space<vmem>>, %arg5: memref<1x128xf32, #tpu.memory_space<vmem>>, %arg6: memref<8x128xf32, #tpu.memory_space<vmem>>) attributes {dimension_semantics = [#tpu.dimension_semantics<parallel>], iteration_bounds = array<i64: 2>, scalar_prefetch = 0 : i64, scratch_operands = 0 : i64, tpu.core_type = #tpu.core_type<tc>, window_params = [{transform_indices = @transform_0, window_bounds = array<i64: 8, 128>}, {pipeline_mode = #tpu.pipeline_mode<synchronous>, transform_indices = @transform_1, window_bounds = array<i64: 128, 128>}, {pipeline_mode = #tpu.pipeline_mode<synchronous>, transform_indices = @transform_2, window_bounds = array<i64: 1, 128>}, {pipeline_mode = #tpu.pipeline_mode<synchronous>, transform_indices = @transform_3, window_bounds = array<i64: 128, 128>}, {pipeline_mode = #tpu.pipeline_mode<synchronous>, transform_indices = @transform_4, window_bounds = array<i64: 1, 128>}, {transform_indices = @transform_5, window_bounds = array<i64: 8, 128>}]} {
    %c0 = arith.constant 0 : index
    %c0_0 = arith.constant 0 : index
    %0 = vector.load %arg1[%c0, %c0_0] : memref<8x128xf32, #tpu.memory_space<vmem>>, vector<8x128xf32>
    %1 = arith.truncf %0 : vector<8x128xf32> to vector<8x128xbf16>
    %c0_1 = arith.constant 0 : index
    %c0_2 = arith.constant 0 : index
    %2 = vector.load %arg2[%c0_1, %c0_2] : memref<128x128xbf16, #tpu.memory_space<vmem>>, vector<128x128xbf16>
    %cst = arith.constant dense<0.000000e+00> : vector<8x128xf32>
    %3 = tpu.matmul %1, %2, %cst {dimension_numbers = #tpu.dot_dimension_numbers<[1], [0], [0], [1], [0, 0, 1, 1], [], []>} : vector<8x128xbf16>, vector<128x128xbf16>, vector<8x128xf32> -> vector<8x128xf32>
    %c0_3 = arith.constant 0 : index
    %c0_4 = arith.constant 0 : index
    %4 = vector.load %arg3[%c0_3, %c0_4] : memref<1x128xf32, #tpu.memory_space<vmem>>, vector<1x128xf32>
    %5 = vector.broadcast %4 : vector<1x128xf32> to vector<8x128xf32>
    %6 = arith.addf %3, %5 : vector<8x128xf32>
    %cst_5 = arith.constant 0.000000e+00 : f32
    %7 = vector.broadcast %cst_5 : f32 to vector<8x128xf32>
    %8 = arith.maximumf %6, %7 : vector<8x128xf32>
    %9 = arith.truncf %8 : vector<8x128xf32> to vector<8x128xbf16>
    %c0_6 = arith.constant 0 : index
    %c0_7 = arith.constant 0 : index
    %10 = vector.load %arg4[%c0_6, %c0_7] : memref<128x128xbf16, #tpu.memory_space<vmem>>, vector<128x128xbf16>
    %cst_8 = arith.constant dense<0.000000e+00> : vector<8x128xf32>
    %11 = tpu.matmul %9, %10, %cst_8 {dimension_numbers = #tpu.dot_dimension_numbers<[1], [0], [0], [1], [0, 0, 1, 1], [], []>} : vector<8x128xbf16>, vector<128x128xbf16>, vector<8x128xf32> -> vector<8x128xf32>
    %c0_9 = arith.constant 0 : index
    %c0_10 = arith.constant 0 : index
    %12 = vector.load %arg5[%c0_9, %c0_10] : memref<1x128xf32, #tpu.memory_space<vmem>>, vector<1x128xf32>
    %13 = vector.broadcast %12 : vector<1x128xf32> to vector<8x128xf32>
    %14 = arith.addf %11, %13 : vector<8x128xf32>
    %cst_11 = arith.constant 0.000000e+00 : f32
    %15 = vector.broadcast %cst_11 : f32 to vector<8x128xf32>
    %16 = arith.maximumf %14, %15 : vector<8x128xf32>
    %17 = arith.addf %16, %0 : vector<8x128xf32>
    %c0_12 = arith.constant 0 : index
    %c0_13 = arith.constant 0 : index
    %18 = vector.load %arg6[%c0_12, %c0_13] : memref<8x128xf32, #tpu.memory_space<vmem>>, vector<8x128xf32>
    tpu.vector_store %arg6[%c0_12, %c0_13], %17 {strides = array<i32>} : memref<8x128xf32, #tpu.memory_space<vmem>>, vector<8x128xf32>,
    return
  }
  func.func @transform_0(%arg0: i32) -> (i32, i32) {
    %c0_i32 = arith.constant 0 : i32
    %c0_i32_0 = arith.constant 0 : i32
    return %arg0, %c0_i32 : i32, i32
  }
  func.func @transform_1(%arg0: i32) -> (i32, i32) {
    %c0_i32 = arith.constant 0 : i32
    %c0_i32_0 = arith.constant 0 : i32
    %c0_i32_1 = arith.constant 0 : i32
    return %c0_i32, %c0_i32_0 : i32, i32
  }
  func.func @transform_2(%arg0: i32) -> (i32, i32) {
    %c0_i32 = arith.constant 0 : i32
    %c0_i32_0 = arith.constant 0 : i32
    %c0_i32_1 = arith.constant 0 : i32
    return %c0_i32, %c0_i32_0 : i32, i32
  }
  func.func @transform_3(%arg0: i32) -> (i32, i32) {
    %c0_i32 = arith.constant 0 : i32
    %c0_i32_0 = arith.constant 0 : i32
    %c0_i32_1 = arith.constant 0 : i32
    return %c0_i32, %c0_i32_0 : i32, i32
  }
  func.func @transform_4(%arg0: i32) -> (i32, i32) {
    %c0_i32 = arith.constant 0 : i32
    %c0_i32_0 = arith.constant 0 : i32
    %c0_i32_1 = arith.constant 0 : i32
    return %c0_i32, %c0_i32_0 : i32, i32
  }
  func.func @transform_5(%arg0: i32) -> (i32, i32) {
    %c0_i32 = arith.constant 0 : i32
    %c0_i32_0 = arith.constant 0 : i32
    return %arg0, %c0_i32 : i32, i32
  }
}

</mosaic_0001>

<bundles_post_ra>
// kernel: residual_layer_packed.1
= control target key start
LH: loop header
LB: loop body
LE: loop exit
PB: predicated region body
PF: predicated region fallthrough
CT: control target
= control target key end

     0   :  { %10 = vsyncpa [#allocation3], 0  ;;  %s1153_s0 = inlined_call_operand.hbm [shape: f32[16,128], index: 0, kind: input, shape index: {}]   ;;  %s1154_s1 = inlined_call_operand.hbm [shape: bf16[128,128], index: 1, kind: input, shape index: {}]   ;;  %s1155_s2 = inlined_call_operand.vmem [shape: f32[1,128], index: 2, kind: input, shape index: {}]   ;;  %s1156_s3 = inlined_call_operand.hbm [shape: bf16[128,128], index: 3, kind: input, shape index: {}]   ;;  %s1157_s4 = inlined_call_operand.vmem [shape: f32[1,128], index: 4, kind: input, shape index: {}]   ;;  %s1158_s5 = inlined_call_operand.hbm [shape: f32[16,128], index: 5, kind: output, shape index: {}]  }
   0x1   :  { %12 = vsyncpa [#allocation3 + $0x1], 0 }
   0x2   :  { %13 = vsyncpa [#allocation6], 0 }
   0x3   :  { %14 = vsyncpa [#allocation4], 0 }
   0x4   :  { %16 = vsyncpa [#allocation4 + $0x1], 0  ;;  %s969_s18 = smov 0   ;;  %s971_s19 = smov 0  }
   0x5   :  { %s973_s20 = smov 0   ;;  %s975_s21 = smov 0  }
   0x6 LB: > { %s990_s22 = sadd.s32 4294967295, %s929_s21   ;;  %s602_s23 = sadd.s32 4294967294, %s929_s21   ;;  %s929_s21 = sphi %s975_s21, %s1180_s21   ;;  %s925_s20 = sphi %s973_s20, %s1179_s20   ;;  %s921_s19 = sphi %s971_s19, %s1178_s19   ;;  %s917_s18 = sphi %s969_s18, %s1177_s18  }
   0x7   : > { %p42_p0 = scmp.ne.s32.totalorder %s921_s19, %s917_s18  ;;  %p1159_p1 = scmp.eq.s32.totalorder %s990_s22, 0 }
   0x8   : > { %p156_p3 = scmp.eq.s32.totalorder %s602_s23, 1  ;;  %p603_p5 = scmp.ge.s32.totalorder %s929_s21, 1 }
   0x9   : > { %p999_p4 = por %p1159_p1, %p42_p0  ;;  %p163_p7 = scmp.lt.s32.totalorder %s929_s21, 3 }
   0xa   : > { %p1004_p6 = por %p156_p3, %p42_p0  ;;  %s931_s27 = smov [#allocation5]  }
   0xb   : > { %s1163_s24 = scalar_select %p999_p4, 1, 0 }
   0xc   : > { %s1164_s25 = scalar_select %p1004_p6, 1, 0 }
   0xd   : > { %p1009_p8 = pnand %p603_p5, %p163_p7  ;;  %s175_s28 = sshll.u32 %s931_s27, 4  ;;  %s176_s28 = int_to_ptr.vmem [resolvable:$true] %s175_s28 }
   0xe   : > { %s932_s30 = smov [#allocation7]   ;;  %s792_s7 = scalar_lea.vmem %s176_s28, 1024 }
   0xf   : > { %s1165_s26 = scalar_select %p1009_p8, 1, 0 }
  0x10   : > { %p706_p9 = pneg %p1009_p8  ;;  %s191_s6 = sshll.u32 %s932_s30, 4  ;;  %s192_s6 = int_to_ptr.vmem [resolvable:$true] %s191_s6 }
  0x11   : > { %p793_p13 = scmp.ne.s32.totalorder %s176_s28, %s792_s7  ;;  %p800_p5 = scmp.lt.s32.totalorder %s176_s28, %s176_s28 }
  0x12   : > { %p1018_p11 = pnand %p706_p9, %p1159_p1  ;;  %p801_p7 = scmp.lt.s32.totalorder %s792_s7, %s792_s7 }
  0x14   : > { %p783_p12 = pneg %p1018_p11  ;;  %p802_p10 = por %p801_p7, %p800_p5 }
  0x16   : > { %p795_p0 = pnand %p793_p13, %p783_p12 }
  0x18   : > { %p796_p3 = pneg %p795_p0 }
  0x1a   : > { %p803_p9 = pnand %p802_p10, %p796_p3 }
  0x1c   : > { %806 = shalt.err (!%p803_p9)
}
  0x1d   : > { %s933_s8 = smov 64   ;;  %s934_s9 = smov 4  }
  0x1e   : > { %709 = dma.hbm_to_vmem [thread:$0]  (!%p1018_p11), %s1154_s1, 1024, %s176_s28, [#allocation6], %s933_s8, %s933_s8, %s934_s9  }
  0x1f   : > { %s818_s12 = scalar_lea.vmem %s192_s6, 1024  ;;  %p826_p2 = scmp.lt.s32.totalorder %s192_s6, %s192_s6 }
  0x20   : > { %p819_p1 = scmp.ne.s32.totalorder %s192_s6, %s818_s12  ;;  %p827_p6 = scmp.lt.s32.totalorder %s818_s12, %s818_s12 }
  0x22   : > { %p821_p13 = pnand %p819_p1, %p783_p12  ;;  %p828_p5 = por %p827_p6, %p826_p2 }
  0x24   : > { %p822_p0 = pneg %p821_p13 }
  0x26   : > { %p829_p10 = pnand %p828_p5, %p822_p0 }
  0x28   : > { %832 = shalt.err (!%p829_p10)
}
  0x29   : > { %712 = dma.hbm_to_vmem [thread:$0]  (!%p1018_p11), %s1156_s3, 1024, %s192_s6, [#allocation6], %s933_s8, %s933_s8, %s934_s9  }
  0x2a   : > { %s1041_s15 = sadd.s32 1, %s929_s21   ;;  %s29_s16 = sadd.s32 1, %s925_s20 }
  0x2b   : > { %s26_s17 = ssub.s32 %s929_s21, %s1041_s15  ;;  %p36_p1 = scmp.ne.s32.totalorder %s925_s20, %s921_s19 }
  0x2c   : > { %p27_p2 = scmp.eq.s32.totalorder %s26_s17, 0  ;;  %p37_p6 = scmp.eq.s32.totalorder %s929_s21, 0 }
  0x2d   : > { %p1167_p12 = scmp.eq.s32.totalorder %s990_s22, 1  ;;  %p723_p7 = scmp.lt.s32.totalorder %s929_s21, 2 }
  0x2e   : > { %s1057_s27 = scalar_select %p27_p2, %s925_s20, %s29_s16  }
  0x2f   : > { %p1051_p3 = por %p1167_p12, %p36_p1  ;;  %p38_p9 = por %p37_p6, %p36_p1 }
  0x30   : > { %s208_s28 = sand.u32 1, %s925_s20   ;;  %s608_s30 = sshll.u32 %s929_s21, 7 }
  0x31   : > { %s1168_s23 = scalar_select %p1051_p3, 1, 0 }
  0x32   : > { %s607_s29 = sshll.u32 %s208_s28, 3  ;;  %s1064_s8 = scalar_lea.hbm %s1153_s0, %s608_s30 }
  0x33   : > { %s212_s9 = scalar_lea.vmem [#allocation2], %s607_s29  ;;  %p1066_p11 = pnand %p723_p7, %p38_p9 }
  0x34   : > { %s219_s10 = sshll.u32 %s212_s9, 4  ;;  %s209_s12 = scalar_lea.sflag [#allocation3], %s208_s28  ;;  %s220_s10 = int_to_ptr.vmem [resolvable:$true] %s219_s10 }
  0x35   : > { %s833_s13 = scalar_lea.hbm %s1064_s8, 128  ;;  %p835_p0 = pneg %p1066_p11 }
  0x36   : > { %p834_p13 = scmp.ne.s32.totalorder %s1064_s8, %s833_s13  ;;  %s838_s17 = scalar_lea.hbm %s1153_s0, 256 }
  0x37   : > { %p839_p1 = scmp.lt.s32.totalorder %s1064_s8, %s1153_s0  ;;  %p840_p2 = scmp.lt.s32.totalorder %s838_s17, %s833_s13 }
  0x38   : > { %p836_p5 = pnand %p835_p0, %p834_p13 }
  0x39   : > { %p841_p6 = por %p840_p2, %p839_p1 }
  0x3a   : > { %p837_p10 = pneg %p836_p5 }
  0x3c   : > { %p842_p12 = pnand %p841_p6, %p837_p10 }
  0x3e   : > { %845 = shalt.err (!%p842_p12)
}
  0x3f   : > { %s846_s6 = scalar_lea.vmem %s220_s10, 128  ;;  %s935_s28 = smov [#allocation2]  }
  0x40   : > { %p847_p7 = scmp.ne.s32.totalorder %s220_s10, %s846_s6  ;;  %s851_s7 = sshll.u32 %s935_s28, 4  ;;  %s852_s7 = int_to_ptr.vmem [resolvable:$false] %s851_s7 }
  0x41   : > { %s853_s9 = scalar_lea.vmem %s852_s7, 256  ;;  %p854_p13 = scmp.lt.s32.totalorder %s220_s10, %s852_s7 }
  0x42   : > { %p849_p9 = pnand %p847_p7, %p835_p0  ;;  %p855_p5 = scmp.lt.s32.totalorder %s853_s9, %s846_s6 }
  0x44   : > { %p850_p3 = pneg %p849_p9  ;;  %p856_p4 = por %p855_p5, %p854_p13 }
  0x46   : > { %p857_p8 = pnand %p856_p4, %p850_p3 }
  0x48   : > { %860 = shalt.err (!%p857_p8)
}
  0x49   : > { %716 = dma.hbm_to_vmem [thread:$0]  (!%p1066_p11), %s1064_s8, 128, %s220_s10, %s209_s12  }
  0x4a   : > { %p1170_p10 = scmp.ne.s32.totalorder %s1165_s26, 0 }
  0x4b   : > { %s1087_s13 = sand.u32 (!%p1170_p10), 1, %s921_s19   ;;  %p1171_p4 = scmp.ne.s32.totalorder (!%p1170_p10), %s1163_s24, 0 }
  0x4c   : > { %228 = sbr.rel (%p1170_p10) target bundleno = 530 (0x212), region = 40  ;;  %s610_s14 = sshll.u32 (!%p1170_p10), %s1087_s13, 3 }
  0x4d   : > { %s231_s16 = scalar_lea.sflag (!%p1170_p10), [#allocation3], %s1087_s13  ;;  %s1093_s17 = scalar_lea.vmem (!%p1170_p10), [#allocation2], %s610_s14 }
  0x51   : > { %904 = dma.done.wait (%p1171_p4), %s231_s16, 128  }
  0x52   : > { %906 = vsyncadd (%p1171_p4), %s231_s16, 4294967168  ;;  %p1172_p8 = scmp.eq.s32.totalorder %s990_s22, 0 }
  0x54   : > { %908 = dma.done.wait (%p1172_p8), [#allocation6], 2048   ;;  %p1173_p3 = pmov %p1172_p8 }
  0x55   : > { %v936_v0 = vmov 0.0   ;;  %vm937_vm0 = vmmov 0   ;;  %v765_v1 = vld [vmem:[#allocation5 + $0x38] sm:$0xff]   ;;  %v766_v2 = vld [vmem:[#allocation5 + $0x30] sm:$0xff]   ;;  %v767_v3 = vld [vmem:[#allocation5 + $0x28] sm:$0xff]   ;;  %s633_s11 = sshll.u32 %s990_s22, 7 }
  0x56   : > { %910 = vsyncadd (%p1173_p3), [#allocation6], 4294965248  ;;  %654 = vmatprep.subr.bf16.mxu0 %v936_v0  ;;  %670 = vmatprep.mubr.msk.bf16.mxu0 %vm937_vm0, %v936_v0  ;;  %v773_v4 = vld [vmem:[#allocation7 + $0x38] sm:$0xff]   ;;  %v768_v5 = vld [vmem:[#allocation5 + $0x20] sm:$0xff]   ;;  %s268_s12 = scalar_lea.vmem [#allocation8], %s610_s14  ;;  %s1116_s28 = scalar_lea.hbm %s1158_s5, %s633_s11 }
  0x57   : > { %674 = vmatprep.subr.bf16.mxu1 %v936_v0  ;;  %690 = vmatprep.mubr.msk.bf16.mxu1 %vm937_vm0, %v936_v0  ;;  %v774_v6 = vld [vmem:[#allocation7 + $0x30] sm:$0xff]   ;;  %v769_v7 = vld [vmem:[#allocation5 + $0x18] sm:$0xff]   ;;  %v775_v8 = vld [vmem:[#allocation7 + $0x28] sm:$0xff]   ;;  %s513_s30 = sshll.u32 %s268_s12, 4  ;;  %s500_s7 = scalar_lea.sflag [#allocation4], %s1087_s13  ;;  %s514_s30 = int_to_ptr.vmem [resolvable:$true] %s513_s30 }
  0x58   : > { %655 = vmatpush3.bf16.msra.mxu0 %v765_v1  ;;  %675 = vmatpush3.bf16.msra.mxu1 %v773_v4  ;;  %v770_v9 = vld [vmem:[#allocation5 + $0x10] sm:$0xff]   ;;  %v776_v10 = vld [vmem:[#allocation7 + $0x20] sm:$0xff]   ;;  %v771_v11 = vld [vmem:[#allocation5 + $0x8] sm:$0xff]   ;;  %s861_s9 = scalar_lea.vmem %s514_s30, 128  ;;  %p1174_p0 = scmp.ne.s32.totalorder %s1168_s23, 0 }
  0x59   : > { %656 = vmatprep.subr.bf16.mxu0 %v936_v0  ;;  %676 = vmatprep.subr.bf16.mxu1 %v936_v0  ;;  %v777_v12 = vld [vmem:[#allocation7 + $0x18] sm:$0xff]   ;;  %v772_v13 = vld [vmem:[#allocation5] sm:$0xff]   ;;  %v778_v15 = vld [vmem:[#allocation7 + $0x10] sm:$0xff]   ;;  %p862_p11 = scmp.ne.s32.totalorder %s514_s30, %s861_s9  ;;  %s938_s22 = smov [#allocation8]  }
  0x5a   : > { %v270_v14 = vld [vmem:[%s1093_s17] sm:$0xff]  ;;  %v779_v17 = vld [vmem:[#allocation7 + $0x8] sm:$0xff]   ;;  %v780_v18 = vld [vmem:[#allocation7] sm:$0xff]   ;;  %s865_s14 = sshll.u32 %s938_s22, 4  ;;  %s866_s14 = int_to_ptr.vmem [resolvable:$false] %s865_s14 }
  0x5b   : > { %v271_v16 = vpack.c.bf16 %v270_v14, %v270_v14  ;;  %v614_v19 = vld [vmem:[%s1155_s2] ss:$0 sm:$0xff]  ;;  %p863_p1 = pnand %p862_p11, %p1174_p0  ;;  %s867_s16 = scalar_lea.vmem %s866_s14, 256 }
  0x5c   : > { %657 = vmatpush3.bf16.msra.mxu0 %v766_v2  ;;  %677 = vmatpush3.bf16.msra.mxu1 %v774_v6  ;;  %v623_v27 = vld [vmem:[%s1157_s4] ss:$0 sm:$0xff]  ;;  %p868_p6 = scmp.lt.s32.totalorder %s514_s30, %s866_s14  ;;  %p869_p12 = scmp.lt.s32.totalorder %s867_s16, %s861_s9 }
  0x5d   : > { %658 = vmatprep.subr.bf16.mxu0 %v936_v0  ;;  %678 = vmatprep.subr.bf16.mxu1 %v936_v0  ;;  %p864_p2 = pneg %p863_p1 }
  0x5e   : > { %p870_p7 = por %p869_p12, %p868_p6 }
  0x60   : > { %659 = vmatpush3.bf16.msra.mxu0 %v767_v3  ;;  %679 = vmatpush3.bf16.msra.mxu1 %v775_v8  ;;  %p871_p9 = pnand %p870_p7, %p864_p2 }
  0x61   : > { %660 = vmatprep.subr.bf16.mxu0 %v936_v0  ;;  %680 = vmatprep.subr.bf16.mxu1 %v936_v0 }
  0x64   : > { %661 = vmatpush3.bf16.msra.mxu0 %v768_v5  ;;  %681 = vmatpush3.bf16.msra.mxu1 %v776_v10 }
  0x65   : > { %662 = vmatprep.subr.bf16.mxu0 %v936_v0  ;;  %682 = vmatprep.subr.bf16.mxu1 %v936_v0 }
  0x68   : > { %663 = vmatpush3.bf16.msra.mxu0 %v769_v7  ;;  %683 = vmatpush3.bf16.msra.mxu1 %v777_v12 }
  0x69   : > { %664 = vmatprep.subr.bf16.mxu0 %v936_v0  ;;  %684 = vmatprep.subr.bf16.mxu1 %v936_v0 }
  0x6c   : > { %665 = vmatpush3.bf16.msra.mxu0 %v770_v9  ;;  %685 = vmatpush3.bf16.msra.mxu1 %v778_v15 }
  0x6d   : > { %666 = vmatprep.subr.bf16.mxu0 %v936_v0  ;;  %686 = vmatprep.subr.bf16.mxu1 %v936_v0 }
  0x70   : > { %667 = vmatpush3.bf16.msra.mxu0 %v771_v11  ;;  %687 = vmatpush3.bf16.msra.mxu1 %v779_v17 }
  0x71   : > { %668 = vmatprep.subr.bf16.mxu0 %v936_v0  ;;  %688 = vmatprep.subr.bf16.mxu1 %v936_v0 }
  0x74   : > { %669 = vmatpush3.bf16.msra.mxu0 %v772_v13  ;;  %689 = vmatpush3.bf16.msra.mxu1 %v780_v18 }
  0x77   : > { %671 = vmatmul.mubr.bf16.vlgmr.msra.gmra.mxu0 %v271_v16 }
 0x137   : > { %v377_v20 = vpop.f32.mrf.mxu0 }
 0x138   : > { %v378_v21 = vadd.f32 %v614_v19, %v377_v20 }
 0x139   : > { %v672_v22 = vpop.f32.mrf.mxu0 }
 0x13a   : > { %v383_v23 = vmax.f32 %v378_v21, 0.0 }
 0x13b   : > { %v380_v24 = vpop.f32.mrf.mxu0 }
 0x13c   : > { %v384_v25 = vpack.c.bf16 %v383_v23, %v383_v23 }
 0x13d   : > { %v673_v26 = vpop.f32.mrf.mxu0 }
 0x13e   : > { %691 = vmatmul.mubr.bf16.vlgmr.msra.gmra.mxu1 %v384_v25 }
 0x1fe   : > { %v490_v28 = vpop.f32.mrf.mxu1 }
 0x1ff   : > { %v491_v29 = vadd.f32 %v623_v27, %v490_v28 }
 0x200   : > { %v692_v30 = vpop.f32.mrf.mxu1 }
 0x201   : > { %v496_v31 = vmax.f32 %v491_v29, 0.0 }
 0x202   : > { %v493_v32 = vpop.f32.mrf.mxu1 }
 0x203   : > { %v497_v33 = vadd.f32 %v496_v31, %v270_v14 }
 0x204   : > { %v693_v34 = vpop.f32.mrf.mxu1 }
 0x205   : > { %498 = vst [vmem:[%s268_s12] sm:$0xff] %v497_v33 }
 0x206   : > { %874 = shalt.err (!%p871_p9)
}
 0x207   : > { %s875_s17 = scalar_lea.hbm %s1116_s28, 128  ;;  %s879_s26 = scalar_lea.hbm %s1158_s5, 256 }
 0x208   : > { %p876_p13 = scmp.ne.s32.totalorder %s1116_s28, %s875_s17  ;;  %p880_p4 = scmp.lt.s32.totalorder %s1116_s28, %s1158_s5 }
 0x209   : > { %p881_p8 = scmp.lt.s32.totalorder %s879_s26, %s875_s17 }
 0x20a   : > { %p877_p5 = pnand %p876_p13, %p1174_p0 }
 0x20b   : > { %p882_p3 = por %p881_p8, %p880_p4 }
 0x20c   : > { %p878_p10 = pneg %p877_p5 }
 0x20e   : > { %p883_p11 = pnand %p882_p3, %p878_p10 }
 0x210   : > { %886 = shalt.err (!%p883_p11)
}
 0x211   : > { %704 = dma.vmem_to_hbm [thread:$0]  (%p1174_p0), %s514_s30, 128, %s1116_s28, %s500_s7  }
 0x212 PF: > { %s525_s11 = sand.u32 1, %s917_s18   ;;  %p1175_p1 = scmp.ne.s32.totalorder %s1164_s25, 0 }
 0x213   : > { %p1176_p2 = scmp.ge.s32.totalorder %s929_s21, 2  ;;  %s526_s12 = scalar_lea.sflag [#allocation4], %s525_s11 }
 0x215   : > { %p718_p6 = pnand %p1176_p2, %p1175_p1 }
 0x217   : > { %p719_p12 = pneg %p718_p6 }
 0x219   : > { %912 = dma.done.wait (%p719_p12), %s526_s12, 128  }
 0x21a   : > { %914 = vsyncadd (%p719_p12), %s526_s12, 4294967168  ;;  %p19_p7 = scmp.ge.s32.totalorder %s1041_s15, 4   ;;  %s1177_s18 = smov %s921_s19 }
 0x21b   : > { %s1178_s19 = smov %s925_s20  ;;  %s1179_s20 = smov %s1057_s27 }
 0x21c   : > { %s1180_s21 = smov %s1041_s15  ;;  %21 = sbr.rel (!%p19_p7) target bundleno = 6 (0x6), region = 93 }
 0x221   :  { %531 = vsyncpa [#allocation3], 1 }
 0x222   :  { %533 = vsyncpa [#allocation3 + $0x1], 1 }
 0x223   :  { %534 = vsyncpa [#allocation6], 1 }
 0x224   :  { %535 = vsyncpa [#allocation4], 1 }
 0x225   :  { %537 = vsyncpa [#allocation4 + $0x1], 1 }

</bundles_post_ra>
